<compile_context>
chip_gen: v7x
topology: tpu7x:2x2x1
jax: 0.10.0
libtpu: 0.0.40
codegen_flags: <defaults>
</compile_context>

<pallas_src>
import functools
import math

import jax
import jax.numpy as jnp
from jax import lax
from jax.experimental import pallas as pl
from jax.experimental.pallas import tpu as pltpu


def _layernorm_f32(x, gamma, beta, eps=1e-12):
    u = jnp.mean(x, axis=-1, keepdims=True)
    s = jnp.mean((x - u) ** 2, axis=-1, keepdims=True)
    return gamma * ((x - u) / jnp.sqrt(s + eps)) + beta


def attention_kernel(
    mask_ref, x_ref,
    wqkv_ref, bqkv_ref, wo_ref, bo_ref, g_ref, b_ref,
    out_ref,
    ctx_ref,
    *, num_heads, head_dim, hidden,
):
    x = x_ref[0]                                   # (S, H) f32
    x_bf = x.astype(jnp.bfloat16)

    # --- fused Q/K/V projection: one MXU launch, bf16 operands, f32 accumulation.
    # 1/sqrt(head_dim) is already folded into the Q columns of wqkv/bqkv.
    qkv = jnp.dot(x_bf, wqkv_ref[...],
                  preferred_element_type=jnp.float32) + bqkv_ref[...]   # (S, 3H) f32

    q_bf = qkv[:, :hidden].astype(jnp.bfloat16)
    k_bf = qkv[:, hidden:2 * hidden].astype(jnp.bfloat16)
    v_bf = qkv[:, 2 * hidden:].astype(jnp.bfloat16)

    mask = mask_ref[0]                             # (1, S): additive key mask

    # --- per-head attention; context goes into an (S, H) f32 VMEM scratch so the
    # output projection is ONE full-K matmul after the loop.
    for h in range(num_heads):
        lo = h * head_dim
        hi = lo + head_dim
        qh = q_bf[:, lo:hi]                        # (S, dh)
        kh = k_bf[:, lo:hi]                        # (S, dh)
        vh = v_bf[:, lo:hi]                        # (S, dh)

        # scores = qh @ kh^T (contraction on dh), f32 accumulation
        scores = lax.dot_general(
            qh, kh, (((1,), (1,)), ((), ())),
            preferred_element_type=jnp.float32)    # (S, S)
        scores = scores + mask                     # broadcast over query rows

        m = jnp.max(scores, axis=-1, keepdims=True)
        e = jnp.exp(scores - m)
        denom = jnp.sum(e, axis=-1, keepdims=True)
        probs = e * pl.reciprocal(denom, approx=True)   # EUP, frees VALU slots

        ctx_h = jnp.dot(probs.astype(jnp.bfloat16), vh,
                        preferred_element_type=jnp.float32)    # (S, dh)
        ctx_ref[:, lo:hi] = ctx_h

    # --- single output projection (K = H fully feeds the MXU) + bias ----------
    attn = jnp.dot(ctx_ref[...].astype(jnp.bfloat16), wo_ref[...],
                   preferred_element_type=jnp.float32) + bo_ref[...]

    # --- SelfOutput: residual + LayerNorm (f32 epilogue) -----------------------
    out_ref[0] = _layernorm_f32(attn + x, g_ref[...], b_ref[...])


def prepare_attention_params(p, *, num_heads):
    """One-time host-side prep:
       * transpose nn.Linear weights to (in, out),
       * fold 1/sqrt(head_dim) into Wq / bq,
       * concatenate Q/K/V weights & biases into a single fused operand,
       * cast MXU operands to bf16 (biases / LayerNorm params stay f32)."""
    f32, bf16 = jnp.float32, jnp.bfloat16
    H = p['wq'].shape[0]
    scale = 1.0 / math.sqrt(H // num_heads)
    wqkv = jnp.concatenate(
        [p['wq'].T * scale, p['wk'].T, p['wv'].T], axis=1).astype(bf16)      # (H, 3H)
    bqkv = jnp.concatenate(
        [p['bq'] * scale, p['bk'], p['bv']])[None, :].astype(f32)            # (1, 3H)
    return {
        'wqkv': wqkv, 'bqkv': bqkv,
        'wo': p['wo'].T.astype(bf16), 'bo': p['bo'][None, :].astype(f32),
        'g': p['g'][None, :].astype(f32), 'b': p['b'][None, :].astype(f32),
    }


def _vmem_ceiling_bytes():
    # Generation-aware cap: ~75% of physical VMEM (v7x: ~48 MiB, v5e/v6e: ~96 MiB).
    try:
        cap = int(getattr(pltpu.get_tpu_info(), "vmem_capacity_bytes",
                          64 * 1024 * 1024))
    except Exception:
        cap = 64 * 1024 * 1024
    return (cap * 3) // 4


def attention_forward(x, mask, prepped, *, num_heads):
    """Attention block via one pallas_call.  x: (B,S,H) f32, mask: (B,1,S) f32."""
    B, S, H = x.shape
    head_dim = H // num_heads

    def const2d(shape):
        # Block index never changes across the batch grid (weights stay resident).
        return pl.BlockSpec(shape, lambda b: (0, 0))

    in_specs = [
        pl.BlockSpec((1, 1, S), lambda b: (b, 0, 0)),    # mask
        pl.BlockSpec((1, S, H), lambda b: (b, 0, 0)),    # hidden states
        const2d((H, 3 * H)), const2d((1, 3 * H)),        # fused Wqkv^T (bf16), bqkv (f32)
        const2d((H, H)), const2d((1, H)),                # Wo^T (bf16), bo (f32)
        const2d((1, H)), const2d((1, H)),                # gamma, beta
    ]

    # Explicit VMEM budget: bf16 weights + f32 activations + score temporaries.
    weight_bytes = (3 * H * H + H * H) * 2 + 7 * H * 4
    act_bytes = 2 * (2 * S * H * 4)                       # double-buffered x / out blocks
    act_bytes += S * 3 * H * 4 + 3 * S * H * 2 + S * H * 4  # qkv f32, q/k/v bf16, ctx scratch
    score_bytes = 2 * 3 * S * S * 4                       # scores/exp/probs live window
    need = 2 * (weight_bytes + act_bytes + score_bytes)
    vmem_limit = int(min(max(need, 16 * 1024 * 1024), _vmem_ceiling_bytes()))

    kernel = functools.partial(attention_kernel,
                               num_heads=num_heads, head_dim=head_dim, hidden=H)

    return pl.pallas_call(
        kernel,
        out_shape=jax.ShapeDtypeStruct((B, S, H), jnp.float32),
        grid_spec=pltpu.PrefetchScalarGridSpec(
            num_scalar_prefetch=0,
            grid=(B,),
            in_specs=in_specs,
            out_specs=pl.BlockSpec((1, S, H), lambda b: (b, 0, 0)),
            scratch_shapes=[pltpu.VMEM((S, H), jnp.float32)],   # per-head context slab
        ),
        compiler_params=pltpu.CompilerParams(
            dimension_semantics=("parallel",),       # batch shards across v7x TCs
            vmem_limit_bytes=vmem_limit,
        ),
    )(
        mask, x,
        prepped['wqkv'], prepped['bqkv'],
        prepped['wo'], prepped['bo'],
        prepped['g'], prepped['b'],
    )


# ---------------- pure-JAX reference (mirrors the PyTorch forward) ----------------
def _ref_attention(x, mask, p, num_heads):
    B, S, H = x.shape
    dh = H // num_heads

    def lin(h, w, b):
        return h @ w.T + b

    q = lin(x, p['wq'], p['bq']).reshape(B, S, num_heads, dh).transpose(0, 2, 1, 3)
    k = lin(x, p['wk'], p['bk']).reshape(B, S, num_heads, dh).transpose(0, 2, 1, 3)
    v = lin(x, p['wv'], p['bv']).reshape(B, S, num_heads, dh).transpose(0, 2, 1, 3)
    scores = jnp.einsum('bhqd,bhkd->bhqk', q, k) / math.sqrt(dh)
    scores = scores + mask[:, None, :, :]
    probs = jax.nn.softmax(scores, axis=-1)
    ctx = jnp.einsum('bhqk,bhkd->bhqd', probs, v).transpose(0, 2, 1, 3).reshape(B, S, H)

    def ln(h, g, b_):
        u = h.mean(-1, keepdims=True)
        s = ((h - u) ** 2).mean(-1, keepdims=True)
        return g * ((h - u) / jnp.sqrt(s + 1e-12)) + b_

    return ln(lin(ctx, p['wo'], p['bo']) + x, p['g'], p['b'])


if __name__ == "__main__":
    # Toy config (NOTE: H=32, S=8 is lane-sparse; real deployments should use
    # H/S multiples of 128 so vregs are dense and stores are unmasked).
    B, S, H = 2, 8, 32
    num_heads = 4

    key = jax.random.PRNGKey(0)
    kx, kq, kk, kv, ko = jax.random.split(key, 5)
    x = jax.random.normal(kx, (B, S, H), jnp.float32)

    # BERT-style additive mask: 0 = keep, -10000 = masked key positions.
    mask = jnp.zeros((B, 1, S), jnp.float32)
    mask = mask.at[:, :, S - 2:].set(-10000.0)

    params = {
        'wq': 0.02 * jax.random.normal(kq, (H, H), jnp.float32),
        'bq': jnp.zeros((H,), jnp.float32),
        'wk': 0.02 * jax.random.normal(kk, (H, H), jnp.float32),
        'bk': jnp.zeros((H,), jnp.float32),
        'wv': 0.02 * jax.random.normal(kv, (H, H), jnp.float32),
        'bv': jnp.zeros((H,), jnp.float32),
        'wo': 0.02 * jax.random.normal(ko, (H, H), jnp.float32),
        'bo': jnp.zeros((H,), jnp.float32),
        'g': jnp.ones((H,), jnp.float32),
        'b': jnp.zeros((H,), jnp.float32),
    }

    prepped = prepare_attention_params(params, num_heads=num_heads)
    out = attention_forward(x, mask, prepped, num_heads=num_heads)
    out = jax.block_until_ready(out)

    ref = _ref_attention(x, mask, params, num_heads)
    assert out.shape == (B, S, H)
    # bf16 MXU operands + approx softmax reciprocal -> wider tolerance than f32.
    max_err = float(jnp.max(jnp.abs(out - ref)))
    assert jnp.allclose(out, ref, atol=2e-2, rtol=2e-2), f"mismatch, max_err={max_err}"

    print("KERNEL_OK")
</pallas_src>

<mosaic_0001>
module attributes {stable_mosaic.version = 11 : i64} {
  func.func @attention_kernel(%arg0: i32, %arg1: memref<1x1x8xf32, #tpu.memory_space<vmem>>, %arg2: memref<1x8x32xf32, #tpu.memory_space<vmem>>, %arg3: memref<32x96xbf16, #tpu.memory_space<vmem>>, %arg4: memref<1x96xf32, #tpu.memory_space<vmem>>, %arg5: memref<32x32xbf16, #tpu.memory_space<vmem>>, %arg6: memref<1x32xf32, #tpu.memory_space<vmem>>, %arg7: memref<1x32xf32, #tpu.memory_space<vmem>>, %arg8: memref<1x32xf32, #tpu.memory_space<vmem>>, %arg9: memref<1x8x32xf32, #tpu.memory_space<vmem>>, %arg10: memref<8x32xf32, #tpu.memory_space<vmem>>) attributes {dimension_semantics = [#tpu.dimension_semantics<parallel>], iteration_bounds = array<i64: 2>, scalar_prefetch = 0 : i64, scratch_operands = 1 : i64, tpu.core_type = #tpu.core_type<tc>, window_params = [{transform_indices = @transform_0, window_bounds = array<i64: 1, 1, 8>}, {transform_indices = @transform_1, window_bounds = array<i64: 1, 8, 32>}, {pipeline_mode = #tpu.pipeline_mode<synchronous>, transform_indices = @transform_2, window_bounds = array<i64: 32, 96>}, {pipeline_mode = #tpu.pipeline_mode<synchronous>, transform_indices = @transform_3, window_bounds = array<i64: 1, 96>}, {pipeline_mode = #tpu.pipeline_mode<synchronous>, transform_indices = @transform_4, window_bounds = array<i64: 32, 32>}, {pipeline_mode = #tpu.pipeline_mode<synchronous>, transform_indices = @transform_5, window_bounds = array<i64: 1, 32>}, {pipeline_mode = #tpu.pipeline_mode<synchronous>, transform_indices = @transform_6, window_bounds = array<i64: 1, 32>}, {pipeline_mode = #tpu.pipeline_mode<synchronous>, transform_indices = @transform_7, window_bounds = array<i64: 1, 32>}, {transform_indices = @transform_8, window_bounds = array<i64: 1, 8, 32>}]} {
    %c0 = arith.constant 0 : index
    %c0_0 = arith.constant 0 : index
    %c0_1 = arith.constant 0 : index
    %0 = vector.load %arg2[%c0, %c0_0, %c0_1] : memref<1x8x32xf32, #tpu.memory_space<vmem>>, vector<1x8x32xf32>
    %1 = vector.shape_cast %0 : vector<1x8x32xf32> to vector<8x32xf32>
    %2 = arith.truncf %1 : vector<8x32xf32> to vector<8x32xbf16>
    %c0_2 = arith.constant 0 : index
    %c0_3 = arith.constant 0 : index
    %3 = vector.load %arg3[%c0_2, %c0_3] : memref<32x96xbf16, #tpu.memory_space<vmem>>, vector<32x96xbf16>
    %cst = arith.constant dense<0.000000e+00> : vector<8x96xf32>
    %4 = tpu.matmul %2, %3, %cst {dimension_numbers = #tpu.dot_dimension_numbers<[1], [0], [0], [1], [0, 0, 1, 1], [], []>} : vector<8x32xbf16>, vector<32x96xbf16>, vector<8x96xf32> -> vector<8x96xf32>
    %c0_4 = arith.constant 0 : index
    %c0_5 = arith.constant 0 : index
    %5 = vector.load %arg4[%c0_4, %c0_5] : memref<1x96xf32, #tpu.memory_space<vmem>>, vector<1x96xf32>
    %6 = vector.broadcast %5 : vector<1x96xf32> to vector<8x96xf32>
    %7 = arith.addf %4, %6 : vector<8x96xf32>
    %8 = vector.extract_strided_slice %7 {offsets = [0, 0], sizes = [8, 32], strides = [1, 1]} : vector<8x96xf32> to vector<8x32xf32>
    %9 = arith.truncf %8 : vector<8x32xf32> to vector<8x32xbf16>
    %10 = vector.extract_strided_slice %7 {offsets = [0, 32], sizes = [8, 32], strides = [1, 1]} : vector<8x96xf32> to vector<8x32xf32>
    %11 = arith.truncf %10 : vector<8x32xf32> to vector<8x32xbf16>
    %12 = vector.extract_strided_slice %7 {offsets = [0, 64], sizes = [8, 32], strides = [1, 1]} : vector<8x96xf32> to vector<8x32xf32>
    %13 = arith.truncf %12 : vector<8x32xf32> to vector<8x32xbf16>
    %c0_6 = arith.constant 0 : index
    %c0_7 = arith.constant 0 : index
    %c0_8 = arith.constant 0 : index
    %14 = vector.load %arg1[%c0_6, %c0_7, %c0_8] : memref<1x1x8xf32, #tpu.memory_space<vmem>>, vector<1x1x8xf32>
    %15 = vector.shape_cast %14 : vector<1x1x8xf32> to vector<1x8xf32>
    %16 = vector.extract_strided_slice %9 {offsets = [0, 0], sizes = [8, 8], strides = [1, 1]} : vector<8x32xbf16> to vector<8x8xbf16>
    %17 = vector.extract_strided_slice %11 {offsets = [0, 0], sizes = [8, 8], strides = [1, 1]} : vector<8x32xbf16> to vector<8x8xbf16>
    %18 = vector.extract_strided_slice %13 {offsets = [0, 0], sizes = [8, 8], strides = [1, 1]} : vector<8x32xbf16> to vector<8x8xbf16>
    %cst_9 = arith.constant dense<0.000000e+00> : vector<8x8xf32>
    %19 = tpu.matmul %16, %17, %cst_9 {dimension_numbers = #tpu.dot_dimension_numbers<[1], [1], [0], [0], [0, 0, 1, 0], [], []>} : vector<8x8xbf16>, vector<8x8xbf16>, vector<8x8xf32> -> vector<8x8xf32>
    %20 = vector.broadcast %15 : vector<1x8xf32> to vector<8x8xf32>
    %21 = arith.addf %19, %20 : vector<8x8xf32>
    %cst_10 = arith.constant dense<0xFF800000> : vector<8xf32>
    %22 = vector.multi_reduction <maximumf>, %21, %cst_10 [1] : vector<8x8xf32> to vector<8xf32>
    %23 = vector.shape_cast %22 : vector<8xf32> to vector<8x1xf32>
    %24 = vector.broadcast %23 : vector<8x1xf32> to vector<8x8xf32>
    %25 = arith.subf %21, %24 : vector<8x8xf32>
    %26 = math.exp %25 : vector<8x8xf32>
    %cst_11 = arith.constant dense<0.000000e+00> : vector<8xf32>
    %27 = vector.multi_reduction <add>, %26, %cst_11 [1] : vector<8x8xf32> to vector<8xf32>
    %28 = vector.shape_cast %27 : vector<8xf32> to vector<8x1xf32>
    %29 = tpu.reciprocal %28 {approx = true} : vector<8x1xf32> -> vector<8x1xf32>
    %30 = vector.broadcast %29 : vector<8x1xf32> to vector<8x8xf32>
    %31 = arith.mulf %26, %30 : vector<8x8xf32>
    %32 = arith.truncf %31 : vector<8x8xf32> to vector<8x8xbf16>
    %cst_12 = arith.constant dense<0.000000e+00> : vector<8x8xf32>
    %33 = tpu.matmul %32, %18, %cst_12 {dimension_numbers = #tpu.dot_dimension_numbers<[1], [0], [0], [1], [0, 0, 1, 1], [], []>} : vector<8x8xbf16>, vector<8x8xbf16>, vector<8x8xf32> -> vector<8x8xf32>
    %c0_13 = arith.constant 0 : index
    %c0_14 = arith.constant 0 : index
    %34 = vector.load %arg10[%c0_13, %c0_14] : memref<8x32xf32, #tpu.memory_space<vmem>>, vector<8x8xf32>
    tpu.vector_store %arg10[%c0_13, %c0_14], %33 {strides = array<i32>} : memref<8x32xf32, #tpu.memory_space<vmem>>, vector<8x8xf32>,
    %35 = vector.extract_strided_slice %9 {offsets = [0, 8], sizes = [8, 8], strides = [1, 1]} : vector<8x32xbf16> to vector<8x8xbf16>
    %36 = vector.extract_strided_slice %11 {offsets = [0, 8], sizes = [8, 8], strides = [1, 1]} : vector<8x32xbf16> to vector<8x8xbf16>
    %37 = vector.extract_strided_slice %13 {offsets = [0, 8], sizes = [8, 8], strides = [1, 1]} : vector<8x32xbf16> to vector<8x8xbf16>
    %cst_15 = arith.constant dense<0.000000e+00> : vector<8x8xf32>
    %38 = tpu.matmul %35, %36, %cst_15 {dimension_numbers = #tpu.dot_dimension_numbers<[1], [1], [0], [0], [0, 0, 1, 0], [], []>} : vector<8x8xbf16>, vector<8x8xbf16>, vector<8x8xf32> -> vector<8x8xf32>
    %39 = vector.broadcast %15 : vector<1x8xf32> to vector<8x8xf32>
    %40 = arith.addf %38, %39 : vector<8x8xf32>
    %cst_16 = arith.constant dense<0xFF800000> : vector<8xf32>
    %41 = vector.multi_reduction <maximumf>, %40, %cst_16 [1] : vector<8x8xf32> to vector<8xf32>
    %42 = vector.shape_cast %41 : vector<8xf32> to vector<8x1xf32>
    %43 = vector.broadcast %42 : vector<8x1xf32> to vector<8x8xf32>
    %44 = arith.subf %40, %43 : vector<8x8xf32>
    %45 = math.exp %44 : vector<8x8xf32>
    %cst_17 = arith.constant dense<0.000000e+00> : vector<8xf32>
    %46 = vector.multi_reduction <add>, %45, %cst_17 [1] : vector<8x8xf32> to vector<8xf32>
    %47 = vector.shape_cast %46 : vector<8xf32> to vector<8x1xf32>
    %48 = tpu.reciprocal %47 {approx = true} : vector<8x1xf32> -> vector<8x1xf32>
    %49 = vector.broadcast %48 : vector<8x1xf32> to vector<8x8xf32>
    %50 = arith.mulf %45, %49 : vector<8x8xf32>
    %51 = arith.truncf %50 : vector<8x8xf32> to vector<8x8xbf16>
    %cst_18 = arith.constant dense<0.000000e+00> : vector<8x8xf32>
    %52 = tpu.matmul %51, %37, %cst_18 {dimension_numbers = #tpu.dot_dimension_numbers<[1], [0], [0], [1], [0, 0, 1, 1], [], []>} : vector<8x8xbf16>, vector<8x8xbf16>, vector<8x8xf32> -> vector<8x8xf32>
    %c0_19 = arith.constant 0 : index
    %c8 = arith.constant 8 : index
    %53 = vector.load %arg10[%c0_19, %c8] : memref<8x32xf32, #tpu.memory_space<vmem>>, vector<8x8xf32>
    tpu.vector_store %arg10[%c0_19, %c8], %52 {strides = array<i32>} : memref<8x32xf32, #tpu.memory_space<vmem>>, vector<8x8xf32>,
    %54 = vector.extract_strided_slice %9 {offsets = [0, 16], sizes = [8, 8], strides = [1, 1]} : vector<8x32xbf16> to vector<8x8xbf16>
    %55 = vector.extract_strided_slice %11 {offsets = [0, 16], sizes = [8, 8], strides = [1, 1]} : vector<8x32xbf16> to vector<8x8xbf16>
    %56 = vector.extract_strided_slice %13 {offsets = [0, 16], sizes = [8, 8], strides = [1, 1]} : vector<8x32xbf16> to vector<8x8xbf16>
    %cst_20 = arith.constant dense<0.000000e+00> : vector<8x8xf32>
    %57 = tpu.matmul %54, %55, %cst_20 {dimension_numbers = #tpu.dot_dimension_numbers<[1], [1], [0], [0], [0, 0, 1, 0], [], []>} : vector<8x8xbf16>, vector<8x8xbf16>, vector<8x8xf32> -> vector<8x8xf32>
    %58 = vector.broadcast %15 : vector<1x8xf32> to vector<8x8xf32>
    %59 = arith.addf %57, %58 : vector<8x8xf32>
    %cst_21 = arith.constant dense<0xFF800000> : vector<8xf32>
    %60 = vector.multi_reduction <maximumf>, %59, %cst_21 [1] : vector<8x8xf32> to vector<8xf32>
    %61 = vector.shape_cast %60 : vector<8xf32> to vector<8x1xf32>
    %62 = vector.broadcast %61 : vector<8x1xf32> to vector<8x8xf32>
    %63 = arith.subf %59, %62 : vector<8x8xf32>
    %64 = math.exp %63 : vector<8x8xf32>
    %cst_22 = arith.constant dense<0.000000e+00> : vector<8xf32>
    %65 = vector.multi_reduction <add>, %64, %cst_22 [1] : vector<8x8xf32> to vector<8xf32>
    %66 = vector.shape_cast %65 : vector<8xf32> to vector<8x1xf32>
    %67 = tpu.reciprocal %66 {approx = true} : vector<8x1xf32> -> vector<8x1xf32>
    %68 = vector.broadcast %67 : vector<8x1xf32> to vector<8x8xf32>
    %69 = arith.mulf %64, %68 : vector<8x8xf32>
    %70 = arith.truncf %69 : vector<8x8xf32> to vector<8x8xbf16>
    %cst_23 = arith.constant dense<0.000000e+00> : vector<8x8xf32>
    %71 = tpu.matmul %70, %56, %cst_23 {dimension_numbers = #tpu.dot_dimension_numbers<[1], [0], [0], [1], [0, 0, 1, 1], [], []>} : vector<8x8xbf16>, vector<8x8xbf16>, vector<8x8xf32> -> vector<8x8xf32>
    %c0_24 = arith.constant 0 : index
    %c16 = arith.constant 16 : index
    %72 = vector.load %arg10[%c0_24, %c16] : memref<8x32xf32, #tpu.memory_space<vmem>>, vector<8x8xf32>
    tpu.vector_store %arg10[%c0_24, %c16], %71 {strides = array<i32>} : memref<8x32xf32, #tpu.memory_space<vmem>>, vector<8x8xf32>,
    %73 = vector.extract_strided_slice %9 {offsets = [0, 24], sizes = [8, 8], strides = [1, 1]} : vector<8x32xbf16> to vector<8x8xbf16>
    %74 = vector.extract_strided_slice %11 {offsets = [0, 24], sizes = [8, 8], strides = [1, 1]} : vector<8x32xbf16> to vector<8x8xbf16>
    %75 = vector.extract_strided_slice %13 {offsets = [0, 24], sizes = [8, 8], strides = [1, 1]} : vector<8x32xbf16> to vector<8x8xbf16>
    %cst_25 = arith.constant dense<0.000000e+00> : vector<8x8xf32>
    %76 = tpu.matmul %73, %74, %cst_25 {dimension_numbers = #tpu.dot_dimension_numbers<[1], [1], [0], [0], [0, 0, 1, 0], [], []>} : vector<8x8xbf16>, vector<8x8xbf16>, vector<8x8xf32> -> vector<8x8xf32>
    %77 = vector.broadcast %15 : vector<1x8xf32> to vector<8x8xf32>
    %78 = arith.addf %76, %77 : vector<8x8xf32>
    %cst_26 = arith.constant dense<0xFF800000> : vector<8xf32>
    %79 = vector.multi_reduction <maximumf>, %78, %cst_26 [1] : vector<8x8xf32> to vector<8xf32>
    %80 = vector.shape_cast %79 : vector<8xf32> to vector<8x1xf32>
    %81 = vector.broadcast %80 : vector<8x1xf32> to vector<8x8xf32>
    %82 = arith.subf %78, %81 : vector<8x8xf32>
    %83 = math.exp %82 : vector<8x8xf32>
    %cst_27 = arith.constant dense<0.000000e+00> : vector<8xf32>
    %84 = vector.multi_reduction <add>, %83, %cst_27 [1] : vector<8x8xf32> to vector<8xf32>
    %85 = vector.shape_cast %84 : vector<8xf32> to vector<8x1xf32>
    %86 = tpu.reciprocal %85 {approx = true} : vector<8x1xf32> -> vector<8x1xf32>
    %87 = vector.broadcast %86 : vector<8x1xf32> to vector<8x8xf32>
    %88 = arith.mulf %83, %87 : vector<8x8xf32>
    %89 = arith.truncf %88 : vector<8x8xf32> to vector<8x8xbf16>
    %cst_28 = arith.constant dense<0.000000e+00> : vector<8x8xf32>
    %90 = tpu.matmul %89, %75, %cst_28 {dimension_numbers = #tpu.dot_dimension_numbers<[1], [0], [0], [1], [0, 0, 1, 1], [], []>} : vector<8x8xbf16>, vector<8x8xbf16>, vector<8x8xf32> -> vector<8x8xf32>
    %c0_29 = arith.constant 0 : index
    %c24 = arith.constant 24 : index
    %91 = vector.load %arg10[%c0_29, %c24] : memref<8x32xf32, #tpu.memory_space<vmem>>, vector<8x8xf32>
    tpu.vector_store %arg10[%c0_29, %c24], %90 {strides = array<i32>} : memref<8x32xf32, #tpu.memory_space<vmem>>, vector<8x8xf32>,
    %c0_30 = arith.constant 0 : index
    %c0_31 = arith.constant 0 : index
    %92 = vector.load %arg10[%c0_30, %c0_31] : memref<8x32xf32, #tpu.memory_space<vmem>>, vector<8x32xf32>
    %93 = arith.truncf %92 : vector<8x32xf32> to vector<8x32xbf16>
    %c0_32 = arith.constant 0 : index
    %c0_33 = arith.constant 0 : index
    %94 = vector.load %arg5[%c0_32, %c0_33] : memref<32x32xbf16, #tpu.memory_space<vmem>>, vector<32x32xbf16>
    %cst_34 = arith.constant dense<0.000000e+00> : vector<8x32xf32>
    %95 = tpu.matmul %93, %94, %cst_34 {dimension_numbers = #tpu.dot_dimension_numbers<[1], [0], [0], [1], [0, 0, 1, 1], [], []>} : vector<8x32xbf16>, vector<32x32xbf16>, vector<8x32xf32> -> vector<8x32xf32>
    %c0_35 = arith.constant 0 : index
    %c0_36 = arith.constant 0 : index
    %96 = vector.load %arg6[%c0_35, %c0_36] : memref<1x32xf32, #tpu.memory_space<vmem>>, vector<1x32xf32>
    %97 = vector.broadcast %96 : vector<1x32xf32> to vector<8x32xf32>
    %98 = arith.addf %95, %97 : vector<8x32xf32>
    %99 = arith.addf %98, %1 : vector<8x32xf32>
    %c0_37 = arith.constant 0 : index
    %c0_38 = arith.constant 0 : index
    %100 = vector.load %arg7[%c0_37, %c0_38] : memref<1x32xf32, #tpu.memory_space<vmem>>, vector<1x32xf32>
    %c0_39 = arith.constant 0 : index
    %c0_40 = arith.constant 0 : index
    %101 = vector.load %arg8[%c0_39, %c0_40] : memref<1x32xf32, #tpu.memory_space<vmem>>, vector<1x32xf32>
    %cst_41 = arith.constant dense<0.000000e+00> : vector<8xf32>
    %102 = vector.multi_reduction <add>, %99, %cst_41 [1] : vector<8x32xf32> to vector<8xf32>
    %103 = vector.shape_cast %102 : vector<8xf32> to vector<8x1xf32>
    %cst_42 = arith.constant 3.200000e+01 : f32
    %104 = vector.broadcast %cst_42 : f32 to vector<8x1xf32>
    %105 = arith.divf %103, %104 : vector<8x1xf32>
    %106 = vector.broadcast %105 : vector<8x1xf32> to vector<8x32xf32>
    %107 = arith.subf %99, %106 : vector<8x32xf32>
    %108 = arith.mulf %107, %107 : vector<8x32xf32>
    %cst_43 = arith.constant dense<0.000000e+00> : vector<8xf32>
    %109 = vector.multi_reduction <add>, %108, %cst_43 [1] : vector<8x32xf32> to vector<8xf32>
    %110 = vector.shape_cast %109 : vector<8xf32> to vector<8x1xf32>
    %cst_44 = arith.constant 3.200000e+01 : f32
    %111 = vector.broadcast %cst_44 : f32 to vector<8x1xf32>
    %112 = arith.divf %110, %111 : vector<8x1xf32>
    %113 = vector.broadcast %105 : vector<8x1xf32> to vector<8x32xf32>
    %114 = arith.subf %99, %113 : vector<8x32xf32>
    %cst_45 = arith.constant 9.99999996E-13 : f32
    %115 = vector.broadcast %cst_45 : f32 to vector<8x1xf32>
    %116 = arith.addf %112, %115 : vector<8x1xf32>
    %117 = math.sqrt %116 : vector<8x1xf32>
    %118 = vector.broadcast %117 : vector<8x1xf32> to vector<8x32xf32>
    %119 = arith.divf %114, %118 : vector<8x32xf32>
    %120 = vector.broadcast %100 : vector<1x32xf32> to vector<8x32xf32>
    %121 = arith.mulf %120, %119 : vector<8x32xf32>
    %122 = vector.broadcast %101 : vector<1x32xf32> to vector<8x32xf32>
    %123 = arith.addf %121, %122 : vector<8x32xf32>
    %c0_46 = arith.constant 0 : index
    %c0_47 = arith.constant 0 : index
    %c0_48 = arith.constant 0 : index
    %124 = vector.load %arg9[%c0_46, %c0_47, %c0_48] : memref<1x8x32xf32, #tpu.memory_space<vmem>>, vector<1x8x32xf32>
    %125 = vector.shape_cast %124 : vector<1x8x32xf32> to vector<8x32xf32>
    %126 = vector.shape_cast %123 : vector<8x32xf32> to vector<1x8x32xf32>
    tpu.vector_store %arg9[%c0_46, %c0_47, %c0_48], %126 {strides = array<i32>} : memref<1x8x32xf32, #tpu.memory_space<vmem>>, vector<1x8x32xf32>,
    return
  }
  func.func @transform_0(%arg0: i32) -> (i32, i32, i32) {
    %c0_i32 = arith.constant 0 : i32
    %c0_i32_0 = arith.constant 0 : i32
    %c0_i32_1 = arith.constant 0 : i32
    return %arg0, %c0_i32, %c0_i32_0 : i32, i32, i32
  }
  func.func @transform_1(%arg0: i32) -> (i32, i32, i32) {
    %c0_i32 = arith.constant 0 : i32
    %c0_i32_0 = arith.constant 0 : i32
    %c0_i32_1 = arith.constant 0 : i32
    return %arg0, %c0_i32, %c0_i32_0 : i32, i32, i32
  }
  func.func @transform_2(%arg0: i32) -> (i32, i32) {
    %c0_i32 = arith.constant 0 : i32
    %c0_i32_0 = arith.constant 0 : i32
    %c0_i32_1 = arith.constant 0 : i32
    return %c0_i32, %c0_i32_0 : i32, i32
  }
  func.func @transform_3(%arg0: i32) -> (i32, i32) {
    %c0_i32 = arith.constant 0 : i32
    %c0_i32_0 = arith.constant 0 : i32
    %c0_i32_1 = arith.constant 0 : i32
    return %c0_i32, %c0_i32_0 : i32, i32
  }
  func.func @transform_4(%arg0: i32) -> (i32, i32) {
    %c0_i32 = arith.constant 0 : i32
    %c0_i32_0 = arith.constant 0 : i32
    %c0_i32_1 = arith.constant 0 : i32
    return %c0_i32, %c0_i32_0 : i32, i32
  }
  func.func @transform_5(%arg0: i32) -> (i32, i32) {
    %c0_i32 = arith.constant 0 : i32
    %c0_i32_0 = arith.constant 0 : i32
    %c0_i32_1 = arith.constant 0 : i32
    return %c0_i32, %c0_i32_0 : i32, i32
  }
  func.func @transform_6(%arg0: i32) -> (i32, i32) {
    %c0_i32 = arith.constant 0 : i32
    %c0_i32_0 = arith.constant 0 : i32
    %c0_i32_1 = arith.constant 0 : i32
    return %c0_i32, %c0_i32_0 : i32, i32
  }
  func.func @transform_7(%arg0: i32) -> (i32, i32) {
    %c0_i32 = arith.constant 0 : i32
    %c0_i32_0 = arith.constant 0 : i32
    %c0_i32_1 = arith.constant 0 : i32
    return %c0_i32, %c0_i32_0 : i32, i32
  }
  func.func @transform_8(%arg0: i32) -> (i32, i32, i32) {
    %c0_i32 = arith.constant 0 : i32
    %c0_i32_0 = arith.constant 0 : i32
    %c0_i32_1 = arith.constant 0 : i32
    return %arg0, %c0_i32, %c0_i32_0 : i32, i32, i32
  }
}

</mosaic_0001>

<bundles_post_ra>
// kernel: tpu_custom_call.1
= control target key start
LH: loop header
LB: loop body
LE: loop exit
PB: predicated region body
PF: predicated region fallthrough
CT: control target
= control target key end

     0   :  { %s2025_s0 = inlined_call_operand.hbm [shape: f32[2,1,8], index: 0, kind: input, shape index: {}]   ;;  %s2026_s1 = inlined_call_operand.hbm [shape: f32[2,8,32], index: 1, kind: input, shape index: {}]   ;;  %s2027_s2 = inlined_call_operand.hbm [shape: bf16[32,96], index: 2, kind: input, shape index: {}]   ;;  %s2028_s3 = inlined_call_operand.vmem [shape: f32[1,96], index: 3, kind: input, shape index: {}]   ;;  %s2029_s4 = inlined_call_operand.hbm [shape: bf16[32,32], index: 4, kind: input, shape index: {}]   ;;  %s2030_s5 = inlined_call_operand.vmem [shape: f32[1,32], index: 5, kind: input, shape index: {}]   ;;  %s2031_s6 = inlined_call_operand.vmem [shape: f32[1,32], index: 6, kind: input, shape index: {}]   ;;  %s2032_s7 = inlined_call_operand.vmem [shape: f32[1,32], index: 7, kind: input, shape index: {}]   ;;  %s2033_s8 = inlined_call_operand.hbm [shape: f32[2,8,32], index: 8, kind: output, shape index: {}]  }
   0x1   :  { %2038 = sst [smem:[#allocation18_spill]] %s2025_s0 }
   0x2   :  { %2039 = sst [smem:[#allocation19_spill]] %s2027_s2 }
   0x3   :  { %2040 = sst [smem:[#allocation20_spill]] %s2029_s4 }
   0x4   :  { %13 = vsyncpa [#allocation4], 0 }
   0x5   :  { %15 = vsyncpa [#allocation4 + $0x1], 0 }
   0x6   :  { %16 = vsyncpa [#allocation7], 0 }
   0x7   :  { %18 = vsyncpa [#allocation7 + $0x1], 0 }
   0x8   :  { %19 = vsyncpa [#allocation10], 0 }
   0x9   :  { %20 = vsyncpa [#allocation5], 0 }
   0xa   :  { %22 = vsyncpa [#allocation5 + $0x1], 0  ;;  %s1652_s27 = smov 0   ;;  %s1654_s28 = smov 0  }
   0xb   :  { %s1656_s29 = smov 0   ;;  %s1658_s30 = smov 0  }
   0xc LB: > { %s1673_s9 = sadd.s32 4294967295, %s1582_s30   ;;  %s1152_s10 = sadd.s32 4294967294, %s1582_s30   ;;  %s1582_s30 = sphi %s1658_s30, %s2066_s30   ;;  %s1578_s29 = sphi %s1656_s29, %s2065_s29   ;;  %s1574_s28 = sphi %s1654_s28, %s2064_s28   ;;  %s1570_s27 = sphi %s1652_s27, %s2063_s27  }
   0xd   : > { %p48_p0 = scmp.ne.s32.totalorder %s1574_s28, %s1570_s27  ;;  %p2034_p1 = scmp.eq.s32.totalorder %s1673_s9, 0 }
   0xe   : > { %p230_p3 = scmp.eq.s32.totalorder %s1152_s10, 1  ;;  %p1153_p5 = scmp.ge.s32.totalorder %s1582_s30, 1 }
   0xf   : > { %p1682_p4 = por %p2034_p1, %p48_p0  ;;  %p237_p7 = scmp.lt.s32.totalorder %s1582_s30, 3 }
  0x10   : > { %p1687_p6 = por %p230_p3, %p48_p0  ;;  %s1584_s14 = smov [#allocation8]  }
  0x11   : > { %s2041_s11 = scalar_select %p1682_p4, 1, 0 }
  0x12   : > { %s2042_s12 = scalar_select %p1687_p6, 1, 0 }
  0x13   : > { %p1692_p8 = pnand %p1153_p5, %p237_p7  ;;  %s249_s15 = sshll.u32 %s1584_s14, 4  ;;  %s1696_s15 = int_to_ptr.vmem [resolvable:$true] %s249_s15 }
  0x14   : > { %s1585_s17 = smov [#allocation9]   ;;  %s2045_s2 = sld [smem:[#allocation19_spill]] }
  0x15   : > { %s2043_s13 = scalar_select %p1692_p8, 1, 0 }
  0x16   : > { %p1288_p9 = pneg %p1692_p8  ;;  %s265_s18 = sshll.u32 %s1585_s17, 4  ;;  %s1707_s18 = int_to_ptr.vmem [resolvable:$true] %s265_s18 }
  0x18   : > { %p1703_p11 = pnand %p1288_p9, %p2034_p1 }
  0x1a   : > { %s1388_s21 = scalar_lea.hbm %s2045_s2, 256  ;;  %p1390_p13 = pneg %p1703_p11 }
  0x1b   : > { %p1389_p12 = scmp.ne.s32.totalorder %s2045_s2, %s1388_s21  ;;  %p1395_p5 = scmp.lt.u32.totalorder %s1388_s21, %s2045_s2 }
  0x1d   : > { %p1391_p0 = pnand %p1390_p13, %p1389_p12 }
  0x1f   : > { %p1392_p3 = pneg %p1391_p0 }
  0x21   : > { %p1397_p7 = pnand %p1395_p5, %p1392_p3 }
  0x23   : > { %1400 = shalt.err (!%p1397_p7)
}
  0x24   : > { %s1401_s26 = scalar_lea.vmem %s1696_s15, 256  ;;  %p1409_p2 = scmp.lt.s32.totalorder %s1696_s15, %s1696_s15 }
  0x25   : > { %p1402_p9 = scmp.ne.s32.totalorder %s1696_s15, %s1401_s26  ;;  %p1410_p12 = scmp.lt.s32.totalorder %s1401_s26, %s1401_s26 }
  0x27   : > { %p1404_p10 = pnand %p1402_p9, %p1390_p13  ;;  %p1411_p0 = por %p1410_p12, %p1409_p2 }
  0x29   : > { %p1405_p1 = pneg %p1404_p10 }
  0x2b   : > { %p1412_p6 = pnand %p1411_p0, %p1405_p1 }
  0x2d   : > { %1415 = shalt.err (!%p1412_p6)
}
  0x2e   : > { %s1586_s10 = smov 64   ;;  %s1587_s14 = smov 4  }
  0x2f   : > { %1291 = dma.hbm_to_vmem [thread:$0]  (!%p1703_p11), %s2045_s2, 256, %s1696_s15, [#allocation7], %s1586_s10, %s1586_s10, %s1587_s14  }
  0x30   : > { %s2046_s4 = sld [smem:[#allocation20_spill]] }
  0x36   : > { %s1416_s22 = scalar_lea.hbm %s2046_s4, 256 }
  0x37   : > { %p1417_p2 = scmp.ne.s32.totalorder %s2046_s4, %s1416_s22  ;;  %p1423_p10 = scmp.lt.u32.totalorder %s1416_s22, %s2046_s4 }
  0x39   : > { %p1419_p1 = pnand %p1417_p2, %p1390_p13 }
  0x3b   : > { %p1420_p6 = pneg %p1419_p1 }
  0x3d   : > { %p1425_p3 = pnand %p1423_p10, %p1420_p6 }
  0x3f   : > { %1428 = shalt.err (!%p1425_p3)
}
  0x40   : > { %s1429_s15 = scalar_lea.vmem %s1707_s18, 256  ;;  %p1437_p12 = scmp.lt.s32.totalorder %s1707_s18, %s1707_s18 }
  0x41   : > { %p1430_p5 = scmp.ne.s32.totalorder %s1707_s18, %s1429_s15  ;;  %p1438_p0 = scmp.lt.s32.totalorder %s1429_s15, %s1429_s15 }
  0x43   : > { %p1432_p7 = pnand %p1430_p5, %p1390_p13  ;;  %p1439_p2 = por %p1438_p0, %p1437_p12 }
  0x45   : > { %p1433_p9 = pneg %p1432_p7 }
  0x47   : > { %p1440_p1 = pnand %p1439_p2, %p1433_p9 }
  0x49   : > { %1443 = shalt.err (!%p1440_p1)
}
  0x4a   : > { %1294 = dma.hbm_to_vmem [thread:$0]  (!%p1703_p11), %s2046_s4, 256, %s1707_s18, [#allocation10], %s1586_s10, %s1586_s10, %s1587_s14  }
  0x4b   : > { %s1762_s20 = sadd.s32 1, %s1582_s30   ;;  %s35_s16 = sadd.s32 1, %s1578_s29 }
  0x4c   : > { %s32_s21 = ssub.s32 %s1582_s30, %s1762_s20  ;;  %p42_p13 = scmp.ne.s32.totalorder %s1578_s29, %s1574_s28 }
  0x4d   : > { %p33_p6 = scmp.eq.s32.totalorder %s32_s21, 0  ;;  %p43_p10 = scmp.eq.s32.totalorder %s1582_s30, 0 }
  0x4e   : > { %p2047_p3 = scmp.eq.s32.totalorder %s1673_s9, 1  ;;  %p1308_p7 = scmp.lt.s32.totalorder %s1582_s30, 2 }
  0x4f   : > { %s1778_s23 = scalar_select %p33_p6, %s1578_s29, %s35_s16  }
  0x50   : > { %p1772_p5 = por %p2047_p3, %p42_p13  ;;  %p44_p9 = por %p43_p10, %p42_p13 }
  0x51   : > { %2049 = sst [smem:[#allocation17_spill]] %s1778_s23  ;;  %s1781_s24 = sand.u32 1, %s1578_s29  }
  0x52   : > { %s2048_s22 = scalar_select %p1772_p5, 1, 0 }
  0x53   : > { %s1157_s18 = sshll.u32 %s1582_s30, 4  ;;  %s291_s10 = scalar_lea.vmem [#allocation3], %s1781_s24 }
  0x54   : > { %s298_s14 = sshll.u32 %s291_s10, 4  ;;  %s2050_s0 = sld [smem:[#allocation18_spill]]  ;;  %s1790_s14 = int_to_ptr.vmem [resolvable:$true] %s298_s14 }
  0x55   : > { %p1792_p11 = pnand %p1308_p7, %p44_p9  ;;  %s1158_s16 = sshll.u32 %s1781_s24, 3 }
  0x56   : > { %s289_s21 = scalar_lea.sflag [#allocation4], %s1781_s24 }
  0x57   : > { %p1446_p0 = pneg %p1792_p11 }
  0x5a   : > { %s1788_s15 = scalar_lea.hbm %s2050_s0, %s1157_s18  ;;  %s1449_s26 = scalar_lea.hbm %s2050_s0, 32 }
  0x5b   : > { %s1444_s10 = scalar_lea.hbm %s1788_s15, 16  ;;  %p1450_p13 = scmp.lt.u32.totalorder %s1788_s15, %s2050_s0 }
  0x5c   : > { %p1445_p12 = scmp.ne.s32.totalorder %s1788_s15, %s1444_s10  ;;  %p1451_p6 = scmp.lt.u32.totalorder %s1449_s26, %s1444_s10 }
  0x5d   : > { %p1453_p3 = scmp.lt.u32.totalorder %s1444_s10, %s1788_s15 }
  0x5e   : > { %p1447_p2 = pnand %p1446_p0, %p1445_p12  ;;  %p1452_p10 = por %p1451_p6, %p1450_p13 }
  0x60   : > { %p1448_p1 = pneg %p1447_p2  ;;  %p1454_p7 = por %p1453_p3, %p1452_p10 }
  0x62   : > { %p1455_p9 = pnand %p1454_p7, %p1448_p1 }
  0x64   : > { %1458 = shalt.err (!%p1455_p9)
}
  0x65   : > { %s1459_s19 = scalar_lea.vmem %s1790_s14, 16  ;;  %s1588_s18 = smov [#allocation3]  }
  0x66   : > { %p1460_p12 = scmp.ne.s32.totalorder %s1790_s14, %s1459_s19  ;;  %s1464_s25 = sshll.u32 %s1588_s18, 4  ;;  %s1465_s25 = int_to_ptr.vmem [resolvable:$false] %s1464_s25 }
  0x67   : > { %s1466_s2 = scalar_lea.vmem %s1465_s25, 32  ;;  %p1467_p4 = scmp.lt.s32.totalorder %s1790_s14, %s1465_s25 }
  0x68   : > { %p1462_p2 = pnand %p1460_p12, %p1446_p0  ;;  %p1468_p13 = scmp.lt.s32.totalorder %s1466_s2, %s1459_s19 }
  0x6a   : > { %p1463_p5 = pneg %p1462_p2  ;;  %p1469_p6 = por %p1468_p13, %p1467_p4 }
  0x6c   : > { %p1470_p10 = pnand %p1469_p6, %p1463_p5 }
  0x6e   : > { %1473 = shalt.err (!%p1470_p10)
}
  0x6f   : > { %1298 = dma.hbm_to_vmem [thread:$0]  (!%p1792_p11), %s1788_s15, 16, %s1790_s14, %s289_s21  }
  0x70   : > { %s1159_s4 = sshll.u32 %s1582_s30, 7  ;;  %s309_s10 = scalar_lea.vmem [#allocation6], %s1158_s16 }
  0x71   : > { %s316_s26 = sshll.u32 %s309_s10, 4  ;;  %s1830_s19 = scalar_lea.hbm %s2026_s1, %s1159_s4  ;;  %s317_s26 = int_to_ptr.vmem [resolvable:$true] %s316_s26 }
  0x72   : > { %s2052_s25 = sand.u32 1, %s1582_s30   ;;  %s1474_s23 = scalar_lea.hbm %s1830_s19, 128 }
  0x73   : > { %s306_s2 = scalar_lea.sflag [#allocation7], %s2052_s25  ;;  %p1475_p4 = scmp.ne.s32.totalorder %s1830_s19, %s1474_s23 }
  0x74   : > { %s1479_s15 = scalar_lea.hbm %s2026_s1, 256  ;;  %p1480_p3 = scmp.lt.u32.totalorder %s1830_s19, %s2026_s1 }
  0x75   : > { %p1477_p5 = pnand %p1475_p4, %p1446_p0  ;;  %p1481_p7 = scmp.lt.u32.totalorder %s1479_s15, %s1474_s23 }
  0x76   : > { %p1483_p12 = scmp.lt.u32.totalorder %s1474_s23, %s1830_s19 }
  0x77   : > { %p1478_p1 = pneg %p1477_p5  ;;  %p1482_p9 = por %p1481_p7, %p1480_p3 }
  0x79   : > { %p1484_p2 = por %p1483_p12, %p1482_p9 }
  0x7b   : > { %p1485_p13 = pnand %p1484_p2, %p1478_p1 }
  0x7d   : > { %1488 = shalt.err (!%p1485_p13)
}
  0x7e   : > { %s1489_s21 = scalar_lea.vmem %s317_s26, 128  ;;  %s1589_s4 = smov [#allocation6]  }
  0x7f   : > { %p1490_p6 = scmp.ne.s32.totalorder %s317_s26, %s1489_s21  ;;  %s1494_s10 = sshll.u32 %s1589_s4, 4  ;;  %s1495_s10 = int_to_ptr.vmem [resolvable:$false] %s1494_s10 }
  0x80   : > { %s1496_s18 = scalar_lea.vmem %s1495_s10, 256  ;;  %p1497_p5 = scmp.lt.s32.totalorder %s317_s26, %s1495_s10 }
  0x81   : > { %p1492_p10 = pnand %p1490_p6, %p1446_p0  ;;  %p1498_p8 = scmp.lt.s32.totalorder %s1496_s18, %s1489_s21 }
  0x83   : > { %p1493_p4 = pneg %p1492_p10  ;;  %p1499_p3 = por %p1498_p8, %p1497_p5 }
  0x85   : > { %p1500_p7 = pnand %p1499_p3, %p1493_p4 }
  0x87   : > { %1503 = shalt.err (!%p1500_p7)
}
  0x88   : > { %1301 = dma.hbm_to_vmem [thread:$0]  (!%p1792_p11), %s1830_s19, 128, %s317_s26, %s306_s2  }
  0x89   : > { %p2053_p1 = scmp.ne.s32.totalorder %s2043_s13, 0 }
  0x8a   : > { %s1856_s23 = sand.u32 (!%p2053_p1), 1, %s1574_s28   ;;  %p2054_p0 = scmp.ne.s32.totalorder (!%p2053_p1), %s2041_s11, 0 }
  0x8b   : > { %325 = sbr.rel (%p2053_p1) target bundleno = 1992 (0x7c8), region = 52  ;;  %s328_s25 = scalar_lea.sflag (!%p2053_p1), [#allocation4], %s1856_s23 }
  0x8c   : > { %s330_s24 = scalar_lea.vmem (!%p2053_p1), [#allocation3], %s1856_s23 }
  0x92   : > { %1549 = dma.done.wait (%p2054_p0), %s328_s25, 16  }
  0x93   : > { %1551 = vsyncadd (%p2054_p0), %s328_s25, 4294967280  ;;  %s335_s17 = sand.u32 1, %s1673_s9   ;;  %s1161_s13 = sshll.u32 %s1856_s23, 3 }
  0x94   : > { %s336_s26 = scalar_lea.sflag [#allocation7], %s335_s17  ;;  %s339_s19 = scalar_lea.vmem [#allocation6], %s1161_s13 }
  0x95   : > { %1553 = dma.done.wait (%p2054_p0), %s336_s26, 128  }
  0x96   : > { %1555 = vsyncadd (%p2054_p0), %s336_s26, 4294967168  ;;  %p2055_p8 = scmp.eq.s32.totalorder %s1673_s9, 0 }
  0x98   : > { %1557 = dma.done.wait (%p2055_p8), [#allocation7], 256   ;;  %p2056_p11 = pmov %p2055_p8 }
  0x99   : > { %p2057_p9 = pmov %p2055_p8 }
  0x9a   : > { %1559 = vsyncadd (%p2056_p11), [#allocation7], 4294967040 }
  0x9b   : > { %1561 = dma.done.wait (%p2057_p9), [#allocation10], 256   ;;  %p2058_p12 = pmov %p2055_p8 }
  0x9c   : > { %v1590_v0 = vmov 0.0   ;;  %vm1591_vm0 = vmmov 0   ;;  %v1364_v1 = vld [vmem:[#allocation8] sm:$0xff]   ;;  %v1365_v2 = vld [vmem:[#allocation8 + $0x8] sm:$0xff]   ;;  %v1886_v3 = vld [vmem:[%s339_s19] sm:$0xff]  ;;  %vm410_vm1 = vcmask 261120  }
  0x9d   : > { %1563 = vsyncadd (%p2058_p12), [#allocation10], 4294967040  ;;  %1210 = vmatprep.subr.bf16.mxu0 %v1590_v0  ;;  %1214 = vmatprep.mubr.msk.bf16.mxu0 %vm1591_vm0, %v1590_v0  ;;  %v386_v4 = vpack.c.bf16 %v1886_v3, %v1886_v3  ;;  %v1165_v5 = vld [vmem:[%s2028_s3] ss:$0 sm:$0xff]  ;;  %s1592_s14 = smov 120   ;;  %s1593_s15 = smov 96  }
  0x9e   : > { %1218 = vmatprep.subr.bf16.mxu1 %v1590_v0  ;;  %1220 = vmatprep.mubr.msk.bf16.mxu1 %vm1591_vm0, %v1590_v0  ;;  %s1594_s0 = smov 80   ;;  %s1595_s16 = smov 88   ;;  %vm465_vm2 = vcmask 64512   ;;  %v1169_v23 = vld [vmem:[%s330_s24] ss:$0 sm:$0xff]  ;;  %vm529_vm3 = vcmask 1043456  }
  0x9f   : > { %1211 = vmatpush3.bf16.msra.mxu0 %v1364_v1  ;;  %s1596_s21 = smov 72   ;;  %s1597_s4 = smov 112   ;;  %vm688_vm4 = vcmask 130112   ;;  %vm804_vm5 = vcmask 195712   ;;  %vm920_vm6 = vcmask 261312  }
  0xa0   : > { %1212 = vmatprep.subr.bf16.mxu0 %v1590_v0  ;;  %s1598_s10 = smov 104   ;;  %s1599_s18 = smov 56  }
  0xa1   : > { %s1600_s25 = smov 64   ;;  %s1601_s24 = smov 40  }
  0xa2   : > { %s1602_s17 = smov 48   ;;  %s1603_s26 = smov 8  }
  0xa3   : > { %1213 = vmatpush3.bf16.msra.mxu0 %v1365_v2  ;;  %s1604_s19 = smov 16   ;;  %s1605_s11 = smov 24  }
  0xa4   : > { %1224 = vmatprep.subr.bf16.mxu0 %v1590_v0  ;;  %p2059_p13 = scmp.ne.s32.totalorder %s2048_s22, 0 }
  0xa6   : > { %1215 = vmatmul.mubr.msk.bf16.vlgmr.msra.gmra.mrb[0].mxu0 %vm410_vm1, %v386_v4 }
  0xa7   : > { %1226 = vmatprep.mubr.msk.bf16.mxu0 %vm1591_vm0, %v1590_v0 }
 0x179   : > { %v448_v6 = vpop.f32.mrb[0].mxu0 }
 0x17a   : > { %v449_v7 = vadd.f32 %v1165_v5, %v448_v6  ;;  %v1216_v8 = vpop.f32.mrb[1].mxu0 }
 0x17b   : > { %v451_v9 = vpop.f32.mrb[2].mxu0 }
 0x17c   : > { %v1898_v10 = vpack.c.bf16 %v449_v7, %v449_v7  ;;  %v1217_v11 = vpop.f32.mrb[3].mxu0 }
 0x17e   : > { %574 = vrot.lane.b32.xlu1 %v1898_v10, %s1592_s14  ;;  %463 = vrot.lane.b32.xlu0 %v1898_v10, %s1593_s15 }
 0x182   : > { %692 = vrot.lane.b32.xlu1 %v1898_v10, %s1594_s0  ;;  %576 = vrot.lane.b32.xlu0 %v1898_v10, %s1595_s16 }
 0x186   : > { %808 = vrot.lane.b32.xlu1 %v1898_v10, %s1596_s21  ;;  %690 = vrot.lane.b32.xlu0 %v1898_v10, %s1597_s4  ;;  %s1185_s4 = sshll.u32 %s1673_s9, 7  ;;  %s1606_s9 = smov [#allocation11]  }
 0x18a   : > { %806 = vrot.lane.b32.xlu0 %v1898_v10, %s1598_s10  ;;  %s383_s10 = scalar_lea.vmem [#allocation11], %s1161_s13  ;;  %s1508_s13 = sshll.u32 %s1606_s9, 4  ;;  %s1509_s13 = int_to_ptr.vmem [resolvable:$false] %s1508_s13 }
 0x1f0   : > { %v464_v12 = vpop.permute.xlu0 %463  ;;  %v575_v15 = vpop.permute.xlu1 %574 }
 0x1f1   : > { %v470_v13 = vsel %vm465_vm2, %v464_v12, 0 }
 0x1f2   : > { %1219 = vmatpush3.bf16.xpose.msra.mxu1 %v470_v13 }
 0x1f3   : > { %1230 = vmatprep.subr.bf16.mxu1 %v1590_v0 }
 0x1f4   : > { %v577_v14 = vpop.permute.xlu0 %576  ;;  %v693_v17 = vpop.permute.xlu1 %692 }
 0x1f5   : > { %v582_v16 = vsel %vm465_vm2, %v577_v14, 0  ;;  %v698_v18 = vsel %vm465_vm2, %v693_v17, 0 }
 0x1f8   : > { %v809_v19 = vpop.permute.xlu1 %808  ;;  %v691_v20 = vpop.permute.xlu0 %690 }
 0x1f9   : > { %1221 = vmatmul.mubr.msk.bf16.vlgmr.msra.gmra.mrb[0].mxu1 %vm465_vm2, %v1898_v10  ;;  %v814_v21 = vsel %vm465_vm2, %v809_v19, 0 }
 0x1fa   : > { %1231 = vmatpush3.bf16.xpose.msra.mxu1 %v582_v16  ;;  %1232 = vmatprep.mubr.msk.bf16.mxu1 %vm1591_vm0, %v1590_v0 }
 0x1fb   : > { %1242 = vmatprep.subr.bf16.mxu1 %v1590_v0 }
 0x1fc   : > { %v807_v22 = vpop.permute.xlu0 %806 }
 0x201   : > { %1233 = vmatmul.mubr.msk.bf16.vlgmr.msra.gmra.mrb[4].mxu1 %vm465_vm2, %v575_v15 }
 0x202   : > { %1243 = vmatpush3.bf16.xpose.msra.mxu1 %v698_v18  ;;  %1244 = vmatprep.mubr.msk.bf16.mxu1 %vm1591_vm0, %v1590_v0 }
 0x203   : > { %1254 = vmatprep.subr.bf16.mxu1 %v1590_v0 }
 0x209   : > { %1245 = vmatmul.mubr.msk.bf16.vlgmr.msra.gmra.mrb[8].mxu1 %vm465_vm2, %v691_v20 }
 0x20a   : > { %1255 = vmatpush3.bf16.xpose.msra.mxu1 %v814_v21  ;;  %1256 = vmatprep.mubr.msk.bf16.mxu1 %vm1591_vm0, %v1590_v0 }
 0x20b   : > { %1266 = vmatprep.subr.bf16.mxu1 %v1590_v0 }
 0x211   : > { %1257 = vmatmul.mubr.msk.bf16.vlgmr.msra.gmra.mrb[12].mxu1 %vm465_vm2, %v807_v22 }
 0x212   : > { %1270 = vmatprep.mubr.msk.bf16.mxu1 %vm1591_vm0, %v1590_v0 }
 0x2cc   : > { %v506_v24 = vpop.f32.mrb[0].mxu1 }
 0x2cd   : > { %v507_v25 = vadd.f32 %v1169_v23, %v506_v24  ;;  %v1222_v26 = vpop.f32.mrb[1].mxu1 }
 0x2ce   : > { %v509_v27 = vpop.f32.mrb[2].mxu1 }
 0x2cf   : > { %v1223_v28 = vpop.f32.mrb[3].mxu1  ;;  %v512_v29 = vsel %vm465_vm2, %v507_v25, -inf }
 0x2d0   : > { %513 = vmax.xlane.f32.xlu1 %v512_v29 }
 0x2d4   : > { %v618_v30 = vpop.f32.mrb[4].mxu1 }
 0x2d5   : > { %v619_v31 = vadd.f32 %v1169_v23, %v618_v30  ;;  %v1234_v32 = vpop.f32.mrb[5].mxu1 }
 0x2d6   : > { %v621_v33 = vpop.f32.mrb[6].mxu1 }
 0x2d7   : > { %v1235_v34 = vpop.f32.mrb[7].mxu1  ;;  %v624_v35 = vsel %vm465_vm2, %v619_v31, -inf }
 0x2d8   : > { %625 = vmax.xlane.f32.xlu0 %v624_v35 }
 0x2dc   : > { %v734_v36 = vpop.f32.mrb[8].mxu1 }
 0x2dd   : > { %v735_v37 = vadd.f32 %v1169_v23, %v734_v36  ;;  %v1246_v38 = vpop.f32.mrb[9].mxu1 }
 0x2de   : > { %v737_v39 = vpop.f32.mrb[10].mxu1  ;;  %v1366_v38 = vld [vmem:[#allocation9] sm:$0xff]  }
 0x2df   : > { %v1247_v40 = vpop.f32.mrb[11].mxu1  ;;  %v740_v41 = vsel %vm465_vm2, %v735_v37, -inf  ;;  %1267 = vmatpush3.bf16.msra.mxu1 %v1366_v38  ;;  %v1367_v39 = vld [vmem:[#allocation9 + $0x8] sm:$0xff]  }
 0x2e0   : > { %741 = vmax.xlane.f32.xlu0 %v740_v41  ;;  %1268 = vmatprep.subr.bf16.mxu1 %v1590_v0 }
 0x2e3   : > { %1269 = vmatpush3.bf16.msra.mxu1 %v1367_v39 }
 0x2e4   : > { %v850_v42 = vpop.f32.mrb[12].mxu1 }
 0x2e5   : > { %v851_v43 = vadd.f32 %v1169_v23, %v850_v42  ;;  %v1258_v44 = vpop.f32.mrb[13].mxu1 }
 0x2e6   : > { %v853_v45 = vpop.f32.mrb[14].mxu1 }
 0x2e7   : > { %v1259_v46 = vpop.f32.mrb[15].mxu1  ;;  %v856_v47 = vsel %vm465_vm2, %v851_v43, -inf }
 0x2e8   : > { %857 = vmax.xlane.f32.xlu1 %v856_v47 }
 0x35d   : > { %v514_v48 = vpop.xlane.xlu1 %513 }
 0x35e   : > { %v515_v49 = vsub.f32 %v507_v25, %v514_v48 }
 0x360   : > { %v516_v50 = vmul.f32 1.442695, %v515_v49 }
 0x362   : > { %1368 = vpow2.f32 %v516_v50 }
 0x365   : > { %v626_v51 = vpop.xlane.xlu0 %625 }
 0x366   : > { %v627_v52 = vsub.f32 %v619_v31, %v626_v51 }
 0x368   : > { %v628_v53 = vmul.f32 1.442695, %v627_v52  ;;  %v1178_v52 = vld [vmem:[%s2030_s5] ss:$0 sm:$0xff] }
 0x36a   : > { %1370 = vpow2.f32 %v628_v53 }
 0x36c   : > { %v1369_v54 = vpop.eup %1368 }
 0x36d   : > { %v742_v55 = vpop.xlane.xlu0 %741  ;;  %v518_v56 = vsel %vm465_vm2, %v1369_v54, 0.0 }
 0x36e   : > { %v743_v57 = vsub.f32 %v735_v37, %v742_v55  ;;  %519 = vadd.xlane.f32.xlu0 %v518_v56 }
 0x370   : > { %v744_v58 = vmul.f32 1.442695, %v743_v57 }
 0x372   : > { %1372 = vpow2.f32 %v744_v58 }
 0x374   : > { %v1371_v59 = vpop.eup %1370 }
 0x375   : > { %v630_v60 = vsel %vm465_vm2, %v1371_v59, 0.0  ;;  %v858_v63 = vpop.xlane.xlu1 %857 }
 0x376   : > { %631 = vadd.xlane.f32.xlu1 %v630_v60  ;;  %v859_v1 = vsub.f32 %v851_v43, %v858_v63 }
 0x378   : > { %v860_v2 = vmul.f32 1.442695, %v859_v1 }
 0x37a   : > { %1374 = vpow2.f32 %v860_v2 }
 0x37c   : > { %v1373_v61 = vpop.eup %1372 }
 0x37d   : > { %v746_v62 = vsel %vm465_vm2, %v1373_v61, 0.0 }
 0x37e   : > { %747 = vadd.xlane.f32.xlu0 %v746_v62 }
 0x384   : > { %v1375_v4 = vpop.eup %1374 }
 0x385   : > { %v862_v5 = vsel %vm465_vm2, %v1375_v4, 0.0 }
 0x387   : > { %636 = vrot.lane.b32.xlu1 %v1898_v10, %s1599_s18  ;;  %s1043_s18 = sshll.u32 %s383_s10, 4  ;;  %s1982_s18 = int_to_ptr.vmem [resolvable:$true] %s1043_s18 }
 0x388   : > { %p1511_p4 = scmp.lt.s32.totalorder %s1982_s18, %s1509_s13 }
 0x394   : > { %524 = vrot.lane.b32.xlu0 %v1898_v10, %s1600_s25 }
 0x398   : > { %868 = vrot.lane.b32.xlu0 %v1898_v10, %s1601_s24 }
 0x3ab   : > { %863 = vadd.xlane.f32.xlu1 %v862_v5 }
 0x3bc   : > { %752 = vrot.lane.b32.xlu1 %v1898_v10, %s1602_s17  ;;  %s1980_s17 = scalar_lea.hbm %s2033_s8, %s1185_s4 }
 0x3fb   : > { %v520_v6 = vpop.xlane.xlu0 %519 }
 0x3fc   : > { %1376 = vrcp.f32 %v520_v6 }
 0x403   : > { %v632_v7 = vpop.xlane.xlu1 %631 }
 0x404   : > { %1378 = vrcp.f32 %v632_v7 }
 0x406   : > { %v1377_v8 = vpop.eup %1376 }
 0x407   : > { %v522_v11 = vmul.f32 %v1377_v8, %v1369_v54  ;;  %v637_v14 = vpop.permute.xlu1 %636 }
 0x408   : > { %v642_v17 = vsel %vm529_vm3, %v637_v14, 0  ;;  %v1183_v14 = vld [vmem:[%s2032_s7] ss:$0 sm:$0xff] }
 0x409   : > { %v523_v15 = vpack.c.bf16 %v522_v11, %v522_v11 }
 0x40b   : > { %v748_v9 = vpop.xlane.xlu0 %747 }
 0x40c   : > { %1380 = vrcp.f32 %v748_v9 }
 0x40e   : > { %v1379_v16 = vpop.eup %1378 }
 0x40f   : > { %v525_v12 = vpop.permute.xlu0 %524  ;;  %v634_v10 = vmul.f32 %v1379_v16, %v1371_v59 }
 0x410   : > { %v531_v13 = vsel %vm529_vm3, %v525_v12, 0  ;;  %v1182_v12 = vld [vmem:[%s2031_s6] ss:$0 sm:$0xff] }
 0x411   : > { %1225 = vmatpush3.bf16.msra.mxu0 %v531_v13  ;;  %v635_v18 = vpack.c.bf16 %v634_v10, %v634_v10 }
 0x412   : > { %1236 = vmatprep.subr.bf16.mxu0 %v1590_v0 }
 0x413   : > { %v869_v24 = vpop.permute.xlu0 %868 }
 0x414   : > { %1227 = vmatmul.mubr.msk.bf16.vlgmr.msra.gmra.mrb[4].mxu0 %vm465_vm2, %v523_v15  ;;  %v874_v26 = vsel %vm529_vm3, %v869_v24, 0 }
 0x415   : > { %1237 = vmatpush3.bf16.msra.mxu0 %v642_v17  ;;  %1238 = vmatprep.mubr.msk.bf16.mxu0 %vm1591_vm0, %v1590_v0 }
 0x416   : > { %1248 = vmatprep.subr.bf16.mxu0 %v1590_v0  ;;  %v1381_v19 = vpop.eup %1380 }
 0x417   : > { %v750_v21 = vmul.f32 %v1381_v19, %v1373_v61 }
 0x419   : > { %v751_v25 = vpack.c.bf16 %v750_v21, %v750_v21 }
 0x41c   : > { %1239 = vmatmul.mubr.msk.bf16.vlgmr.msra.gmra.mrb[8].mxu0 %vm465_vm2, %v635_v18 }
 0x41d   : > { %1250 = vmatprep.mubr.msk.bf16.mxu0 %vm1591_vm0, %v1590_v0 }
 0x438   : > { %v864_v20 = vpop.xlane.xlu1 %863 }
 0x439   : > { %1382 = vrcp.f32 %v864_v20 }
 0x43c   : > { %v753_v22 = vpop.permute.xlu1 %752 }
 0x43d   : > { %v758_v23 = vsel %vm529_vm3, %v753_v22, 0 }
 0x43e   : > { %1249 = vmatpush3.bf16.msra.mxu0 %v758_v23 }
 0x43f   : > { %1260 = vmatprep.subr.bf16.mxu0 %v1590_v0 }
 0x441   : > { %1251 = vmatmul.mubr.msk.bf16.vlgmr.msra.gmra.mrb[12].mxu0 %vm465_vm2, %v751_v25 }
 0x442   : > { %1261 = vmatpush3.bf16.msra.mxu0 %v874_v26  ;;  %1262 = vmatprep.mubr.msk.bf16.mxu0 %vm1591_vm0, %v1590_v0 }
 0x443   : > { %v1383_v27 = vpop.eup %1382 }
 0x444   : > { %v866_v28 = vmul.f32 %v1383_v27, %v1375_v4 }
 0x446   : > { %v867_v29 = vpack.c.bf16 %v866_v28, %v866_v28 }
 0x449   : > { %1263 = vmatmul.mubr.msk.bf16.vlgmr.msra.gmra.mrb[16].mxu0 %vm465_vm2, %v867_v29 }
 0x4e7   : > { %v567_v30 = vpop.f32.mrb[4].mxu0 }
 0x4e8   : > { %573 = vst.msk [vmem:[#allocation2] sm:$0xff] %vm465_vm2, %v567_v30  ;;  %v1228_v31 = vpop.f32.mrb[5].mxu0 }
 0x4e9   : > { %v570_v32 = vpop.f32.mrb[6].mxu0 }
 0x4ea   : > { %v1229_v33 = vpop.f32.mrb[7].mxu0 }
 0x4ef   : > { %v678_v34 = vpop.f32.mrb[8].mxu0 }
 0x4f0   : > { %685 = vrot.lane.b32.xlu1 %v678_v34, %s1603_s26  ;;  %v1240_v35 = vpop.f32.mrb[9].mxu0  ;;  %s1030_s26 = scalar_lea.sflag [#allocation5], %s1856_s23 }
 0x4f1   : > { %v681_v36 = vpop.f32.mrb[10].mxu0 }
 0x4f2   : > { %v1241_v37 = vpop.f32.mrb[11].mxu0 }
 0x514   : > { %v794_v40 = vpop.f32.mrb[12].mxu0 }
 0x515   : > { %801 = vrot.lane.b32.xlu0 %v794_v40, %s1604_s19  ;;  %v1252_v41 = vpop.f32.mrb[13].mxu0  ;;  %s1504_s19 = scalar_lea.vmem %s1982_s18, 128 }
 0x516   : > { %v797_v42 = vpop.f32.mrb[14].mxu0  ;;  %p1505_p2 = scmp.ne.s32.totalorder %s1982_s18, %s1504_s19 }
 0x517   : > { %v1253_v43 = vpop.f32.mrb[15].mxu0 }
 0x518   : > { %p1506_p6 = pnand %p1505_p2, %p2059_p13 }
 0x51a   : > { %p1507_p10 = pneg %p1506_p6 }
 0x51c   : > { %v910_v44 = vpop.f32.mrb[16].mxu0 }
 0x51d   : > { %917 = vrot.lane.b32.xlu1 %v910_v44, %s1605_s11  ;;  %v1264_v45 = vpop.f32.mrb[17].mxu0  ;;  %s1510_s11 = scalar_lea.vmem %s1509_s13, 256 }
 0x51e   : > { %v913_v46 = vpop.f32.mrb[18].mxu0  ;;  %p1512_p5 = scmp.lt.s32.totalorder %s1510_s11, %s1504_s19 }
 0x51f   : > { %v1265_v47 = vpop.f32.mrb[19].mxu0 }
 0x520   : > { %p1513_p3 = por %p1512_p5, %p1511_p4 }
 0x522   : > { %p1514_p7 = pnand %p1513_p3, %p1507_p10 }
 0x562   : > { %v686_v48 = vpop.permute.xlu1 %685 }
 0x563   : > { %689 = vst.msk [vmem:[#allocation2] sm:$0xff] %vm688_vm4, %v686_v48 }
 0x587   : > { %v802_v49 = vpop.permute.xlu0 %801 }
 0x588   : > { %805 = vst.msk [vmem:[#allocation2] sm:$0xff] %vm804_vm5, %v802_v49 }
 0x58f   : > { %v918_v0 = vpop.permute.xlu1 %917 }
 0x590   : > { %921 = vst.msk [vmem:[#allocation2] sm:$0xff] %vm920_vm6, %v918_v0 }
 0x597   : > { %v922_v50 = vld [vmem:[#allocation2] sm:$0xff] }
 0x598   : > { %v923_v51 = vpack.c.bf16 %v922_v50, %v922_v50 }
 0x59a   : > { %1271 = vmatmul.mubr.msk.bf16.vlgmr.msra.gmra.mrb[16].mxu1 %vm410_vm1, %v923_v51 }
 0x66d   : > { %v984_v53 = vpop.f32.mrb[16].mxu1 }
 0x66e   : > { %v985_v54 = vadd.f32 %v1178_v52, %v984_v53  ;;  %v1272_v55 = vpop.f32.mrb[17].mxu1 }
 0x66f   : > { %v987_v56 = vpop.f32.mrb[18].mxu1 }
 0x670   : > { %v1273_v57 = vpop.f32.mrb[19].mxu1  ;;  %v990_v58 = vadd.f32 %v985_v54, %v1886_v3 }
 0x672   : > { %v993_v59 = vsel %vm410_vm1, %v990_v58, 0.0 }
 0x673   : > { %994 = vadd.xlane.f32.xlu0 %v993_v59 }
 0x700   : > { %v995_v60 = vpop.xlane.xlu0 %994 }
 0x701   : > { %v997_v61 = vmul.f32 0.03125, %v995_v60 }
 0x703   : > { %v998_v62 = vsub.f32 %v990_v58, %v997_v61 }
 0x705   : > { %v999_v63 = vmul.f32 %v998_v62, %v998_v62 }
 0x707   : > { %v1000_v1 = vsel %vm410_vm1, %v999_v63, 0.0 }
 0x708   : > { %1001 = vadd.xlane.f32.xlu1 %v1000_v1 }
 0x795   : > { %v1002_v2 = vpop.xlane.xlu1 %1001 }
 0x796   : > { %v1003_v4 = vmul.f32 0.03125, %v1002_v2 }
 0x798   : > { %v1004_v5 = vadd.f32 1e-12, %v1003_v4 }
 0x79a   : > { %1384 = vrsqrt.f32 %v1004_v5  ;;  %vm1007_vm7 = vcmp.eq.f32.partialorder %v1004_v5, inf  ;;  %v1010_v3 = vand.u32 2147483648, %v1004_v5  ;;  %vm1009_vm8 = vcmp.eq.f32.partialorder %v1004_v5, 0.0 }
 0x7a4   : > { %v1385_v6 = vpop.eup %1384 }
 0x7a5   : > { %v1006_v7 = vmul.f32 %v1385_v6, %v1004_v5 }
 0x7a7   : > { %v1008_v8 = vsel %vm1007_vm7, %v1004_v5, %v1006_v7 }
 0x7a8   : > { %v1011_v9 = vsel %vm1009_vm8, %v1010_v3, %v1008_v8 }
 0x7a9   : > { %1386 = vrcp.f32 %v1011_v9 }
 0x7b3   : > { %v1387_v11 = vpop.eup %1386 }
 0x7b4   : > { %v1013_v13 = vmul.f32 %v1387_v11, %v998_v62 }
 0x7b6   : > { %v1020_v15 = vmul.f32 %v1182_v12, %v1013_v13 }
 0x7b8   : > { %v1027_v16 = vadd.f32 %v1183_v14, %v1020_v15 }
 0x7ba   : > { %1028 = vst.msk [vmem:[%s383_s10] sm:$0xff] %vm410_vm1, %v1027_v16 }
 0x7bb   : > { %1517 = shalt.err (!%p1514_p7)
}
 0x7bc   : > { %s1518_s23 = scalar_lea.hbm %s1980_s17, 128  ;;  %s1522_s15 = scalar_lea.hbm %s2033_s8, 256 }
 0x7bd   : > { %p1519_p1 = scmp.ne.s32.totalorder %s1980_s17, %s1518_s23  ;;  %p1523_p11 = scmp.lt.u32.totalorder %s1980_s17, %s2033_s8 }
 0x7be   : > { %p1524_p9 = scmp.lt.u32.totalorder %s1522_s15, %s1518_s23  ;;  %p1526_p2 = scmp.lt.u32.totalorder %s1518_s23, %s1980_s17 }
 0x7bf   : > { %p1520_p0 = pnand %p1519_p1, %p2059_p13 }
 0x7c0   : > { %p1525_p12 = por %p1524_p9, %p1523_p11 }
 0x7c1   : > { %p1521_p8 = pneg %p1520_p0 }
 0x7c2   : > { %p1527_p6 = por %p1526_p2, %p1525_p12 }
 0x7c4   : > { %p1528_p10 = pnand %p1527_p6, %p1521_p8 }
 0x7c6   : > { %1531 = shalt.err (!%p1528_p10)
}
 0x7c7   : > { %1286 = dma.vmem_to_hbm [thread:$0]  (%p2059_p13), %s1982_s18, 128, %s1980_s17, %s1030_s26  }
 0x7c8 PF: > { %s1055_s21 = sand.u32 1, %s1570_s27   ;;  %p2060_p4 = scmp.ne.s32.totalorder %s2042_s12, 0 }
 0x7c9   : > { %p2061_p5 = scmp.ge.s32.totalorder %s1582_s30, 2  ;;  %s1056_s4 = scalar_lea.sflag [#allocation5], %s1055_s21 }
 0x7cb   : > { %p1303_p3 = pnand %p2061_p5, %p2060_p4 }
 0x7cd   : > { %1565 = dma.done.wait (!%p1303_p3), %s1056_s4, 128  }
 0x7ce   : > { %1567 = vsyncadd (!%p1303_p3), %s1056_s4, 4294967168  ;;  %s2062_s10 = sld [smem:[#allocation17_spill]]  ;;  %p25_p7 = scmp.ge.s32.totalorder %s1762_s20, 4  }
 0x7cf   : > { %s2063_s27 = smov %s1574_s28  ;;  %s2064_s28 = smov %s1578_s29 }
 0x7d0   : > { %s2066_s30 = smov %s1762_s20  ;;  %27 = sbr.rel (!%p25_p7) target bundleno = 12 (0xc), region = 118 }
 0x7d4   : > { %s2065_s29 = smov %s2062_s10 }
 0x7d7   :  { %1061 = vsyncpa [#allocation4], 1 }
 0x7d8   :  { %1063 = vsyncpa [#allocation4 + $0x1], 1 }
 0x7d9   :  { %1064 = vsyncpa [#allocation7], 1 }
 0x7da   :  { %1066 = vsyncpa [#allocation7 + $0x1], 1 }
 0x7db   :  { %1067 = vsyncpa [#allocation10], 1 }
 0x7dc   :  { %1068 = vsyncpa [#allocation5], 1 }
 0x7dd   :  { %1070 = vsyncpa [#allocation5 + $0x1], 1 }

</bundles_post_ra>
